<compile_context>
chip_gen: v7x
topology: tpu7x:2x2x1
jax: 0.10.0
libtpu: 0.0.40
codegen_flags: <defaults>
</compile_context>

<pallas_src>
import functools

import jax
import jax.numpy as jnp
from jax.experimental import pallas as pl
from jax.experimental.pallas import tpu as pltpu


def _round_up(n, m):
    return ((n + m - 1) // m) * m


def _tagger_kernel(x_ref, w_ref, *rest, normalize, inv_temp, use_bias):
    # x_ref: (tm, D)   row tile of flattened (B*T, D) activations (native dtype)
    # w_ref: (D, Lp)   full lane-padded transposed weight (native dtype)
    # b_ref: (1, Lp)   lane-padded bias (only present when use_bias)
    # o_ref: (tm, Lp)  logits tile
    if use_bias:
        b_ref, o_ref = rest
    else:
        (o_ref,) = rest

    x = x_ref[...]
    if normalize:
        xf = x.astype(jnp.float32)
        sumsq = jnp.sum(xf * xf, axis=-1, keepdims=True)
        # x / max(||x||_2, 1e-12)  ==  x * rsqrt(max(sumsq, 1e-24))   (EUP rsqrt)
        scale = jax.lax.rsqrt(jnp.maximum(sumsq, jnp.float32(1e-24)))
        x = (xf * scale).astype(x_ref.dtype)

    logits = jnp.dot(x, w_ref[...], preferred_element_type=jnp.float32)
    if use_bias:
        logits = logits + b_ref[...].astype(jnp.float32)
    if inv_temp is not None:
        logits = logits * jnp.float32(inv_temp)

    o_ref[...] = logits.astype(o_ref.dtype)


def _pick_row_tile(m_rows, d, l_pad, x_bytes, w_bytes, out_bytes,
                   budget_bytes=32 * 1024 * 1024, max_tile=1024):
    """Largest HBM/MXU-friendly row tile whose double-buffered footprint fits."""
    m8 = _round_up(max(m_rows, 1), 8)
    fixed = 2 * d * l_pad * w_bytes + 2 * l_pad * w_bytes  # weight + bias buffers

    def footprint(tm):
        return fixed + 2 * tm * d * x_bytes + 2 * tm * l_pad * out_bytes

    # Prefer large tiles but keep >= 2 grid steps when the row count allows it
    # (lets the "parallel" grid axis shard across 2 TensorCores on v7x).
    for tm in (1024, 512, 256, 128):
        if tm > max_tile:
            continue
        if 2 * tm <= m8 and footprint(tm) <= budget_bytes:
            return tm

    # Few rows: a single tile covering everything (rounded to sublane quantum).
    tm = min(m8, max_tile)
    while tm > 8 and footprint(tm) > budget_bytes:
        tm = _round_up(tm // 2, 8)
    return max(tm, 8)


def tagger_forward(x, weight, bias=None, *, normalize=False, temp=-1.0,
                   tm=None, out_dtype=jnp.float32,
                   vmem_budget_bytes=32 * 1024 * 1024):
    """Pallas implementation of Tagger.clf_forward logits.

    x:      (B, T, D) activations (f32 or bf16)
    weight: (L, D)    nn.Linear weight (PyTorch convention)
    bias:   (L,)      nn.Linear bias, or None when ignore_bias=True
    """
    B, T, D = x.shape
    L = weight.shape[0]
    M = B * T

    Lp = _round_up(L, 128)                      # lane-dense output columns
    x_bytes = jnp.dtype(x.dtype).itemsize
    w_bytes = jnp.dtype(weight.dtype).itemsize
    o_bytes = jnp.dtype(out_dtype).itemsize

    if tm is None:
        tm = _pick_row_tile(M, D, Lp, x_bytes, w_bytes, o_bytes,
                            budget_bytes=vmem_budget_bytes)
    Mp = _round_up(M, tm)
    grid = (Mp // tm,)

    x2 = x.reshape(M, D)
    if Mp != M:
        x2 = jnp.pad(x2, ((0, Mp - M), (0, 0)))

    w_t = weight.T                              # (D, L)
    if Lp != L:
        w_t = jnp.pad(w_t, ((0, 0), (0, Lp - L)))

    use_bias = bias is not None
    inv_temp = (1.0 / float(temp)) if float(temp) > 0.0 else None

    in_specs = [
        pl.BlockSpec((tm, D), lambda i: (i, 0)),   # x row tile
        pl.BlockSpec((D, Lp), lambda i: (0, 0)),   # full padded weight (constant block)
    ]
    args = [x2, w_t]
    if use_bias:
        b2 = bias.reshape(1, L)
        if Lp != L:
            b2 = jnp.pad(b2, ((0, 0), (0, Lp - L)))
        in_specs.append(pl.BlockSpec((1, Lp), lambda i: (0, 0)))
        args.append(b2)

    kernel = functools.partial(_tagger_kernel, normalize=normalize,
                               inv_temp=inv_temp, use_bias=use_bias)

    # Double-buffered footprint estimate → explicit (conservative) VMEM limit.
    est = (2 * tm * D * x_bytes + 2 * D * Lp * w_bytes
           + 2 * Lp * w_bytes + 2 * tm * Lp * o_bytes)
    vmem_limit = int(min(max(2 * est, 32 * 1024 * 1024), 48 * 1024 * 1024))

    out = pl.pallas_call(
        kernel,
        out_shape=jax.ShapeDtypeStruct((Mp, Lp), out_dtype),
        grid_spec=pltpu.PrefetchScalarGridSpec(
            num_scalar_prefetch=0,
            grid=grid,
            in_specs=in_specs,
            out_specs=pl.BlockSpec((tm, Lp), lambda i: (i, 0)),
        ),
        compiler_params=pltpu.CompilerParams(
            dimension_semantics=("parallel",),
            vmem_limit_bytes=vmem_limit,
        ),
    )(*args)

    return out[:M, :L].reshape(B, T, L)


def _reference_forward(x, weight, bias, normalize, temp):
    xf = x.astype(jnp.float32)
    if normalize:
        n = jnp.sqrt(jnp.sum(xf * xf, axis=-1, keepdims=True))
        xf = xf / jnp.maximum(n, 1e-12)
    logits = xf @ weight.T.astype(jnp.float32)
    if bias is not None:
        logits = logits + bias.astype(jnp.float32)
    if temp > 0.0:
        logits = logits / temp
    return logits


if __name__ == "__main__":
    key = jax.random.PRNGKey(0)

    # ---- Test 1: small f32 head, normalize + temperature + bias,
    #              num_labels not a multiple of 128 (exercises lane padding). ----
    B, T, D, L = 2, 8, 32, 9
    kx, kw, kb, key = jax.random.split(key, 4)
    bound = 1.0 / (D ** 0.5)
    x = jax.random.normal(kx, (B, T, D), dtype=jnp.float32)
    weight = jax.random.uniform(kw, (L, D), jnp.float32, -bound, bound)
    bias = jax.random.uniform(kb, (L,), jnp.float32, -bound, bound)

    logits = tagger_forward(x, weight, bias, normalize=True, temp=0.5)
    logits = jax.block_until_ready(logits)
    ref = _reference_forward(x, weight, bias, True, 0.5)
    assert logits.shape == (B, T, L)
    assert jnp.allclose(logits, ref, atol=1e-4, rtol=1e-4), "f32 mismatch vs reference"

    # ---- Test 2: bf16 activations/weights, ignore_bias=True, no temp,
    #              enough rows for a multi-step grid + wrapper row padding. ----
    B2, T2, D2, L2 = 4, 250, 256, 21           # M = 1000 (not divisible by tile)
    kx2, kw2, key = jax.random.split(key, 3)
    bound2 = 1.0 / (D2 ** 0.5)
    x_bf = jax.random.normal(kx2, (B2, T2, D2), dtype=jnp.float32).astype(jnp.bfloat16)
    w_bf = jax.random.uniform(kw2, (L2, D2), jnp.float32,
                              -bound2, bound2).astype(jnp.bfloat16)

    logits2 = tagger_forward(x_bf, w_bf, None, normalize=True, temp=-1.0)
    logits2 = jax.block_until_ready(logits2)
    ref2 = _reference_forward(x_bf.astype(jnp.float32), w_bf.astype(jnp.float32),
                              None, True, -1.0)
    assert logits2.shape == (B2, T2, L2)
    assert jnp.allclose(logits2, ref2, atol=5e-2, rtol=5e-2), "bf16 mismatch vs reference"

    print("KERNEL_OK")
</pallas_src>

<mosaic_0001>
module attributes {stable_mosaic.version = 11 : i64} {
  func.func @_tagger_kernel(%arg0: i32, %arg1: memref<16x32xf32, #tpu.memory_space<vmem>>, %arg2: memref<32x128xf32, #tpu.memory_space<vmem>>, %arg3: memref<1x128xf32, #tpu.memory_space<vmem>>, %arg4: memref<16x128xf32, #tpu.memory_space<vmem>>) attributes {dimension_semantics = [#tpu.dimension_semantics<parallel>], iteration_bounds = array<i64: 1>, scalar_prefetch = 0 : i64, scratch_operands = 0 : i64, tpu.core_type = #tpu.core_type<tc>, window_params = [{transform_indices = @transform_0, window_bounds = array<i64: 16, 32>}, {pipeline_mode = #tpu.pipeline_mode<synchronous>, transform_indices = @transform_1, window_bounds = array<i64: 32, 128>}, {pipeline_mode = #tpu.pipeline_mode<synchronous>, transform_indices = @transform_2, window_bounds = array<i64: 1, 128>}, {transform_indices = @transform_3, window_bounds = array<i64: 16, 128>}]} {
    %c0 = arith.constant 0 : index
    %c0_0 = arith.constant 0 : index
    %0 = vector.load %arg1[%c0, %c0_0] : memref<16x32xf32, #tpu.memory_space<vmem>>, vector<16x32xf32>
    %1 = arith.mulf %0, %0 : vector<16x32xf32>
    %cst = arith.constant dense<0.000000e+00> : vector<16xf32>
    %2 = vector.multi_reduction <add>, %1, %cst [1] : vector<16x32xf32> to vector<16xf32>
    %3 = vector.shape_cast %2 : vector<16xf32> to vector<16x1xf32>
    %cst_1 = arith.constant 1.000000e-24 : f32
    %4 = vector.broadcast %cst_1 : f32 to vector<16x1xf32>
    %5 = arith.maximumf %3, %4 : vector<16x1xf32>
    %6 = math.rsqrt %5 : vector<16x1xf32>
    %7 = vector.broadcast %6 : vector<16x1xf32> to vector<16x32xf32>
    %8 = arith.mulf %0, %7 : vector<16x32xf32>
    %c0_2 = arith.constant 0 : index
    %c0_3 = arith.constant 0 : index
    %9 = vector.load %arg2[%c0_2, %c0_3] : memref<32x128xf32, #tpu.memory_space<vmem>>, vector<32x128xf32>
    %cst_4 = arith.constant dense<0.000000e+00> : vector<16x128xf32>
    %10 = tpu.matmul %8, %9, %cst_4 {dimension_numbers = #tpu.dot_dimension_numbers<[1], [0], [0], [1], [0, 0, 1, 1], [], []>} : vector<16x32xf32>, vector<32x128xf32>, vector<16x128xf32> -> vector<16x128xf32>
    %c0_5 = arith.constant 0 : index
    %c0_6 = arith.constant 0 : index
    %11 = vector.load %arg3[%c0_5, %c0_6] : memref<1x128xf32, #tpu.memory_space<vmem>>, vector<1x128xf32>
    %12 = vector.broadcast %11 : vector<1x128xf32> to vector<16x128xf32>
    %13 = arith.addf %10, %12 : vector<16x128xf32>
    %cst_7 = arith.constant 2.000000e+00 : f32
    %14 = vector.broadcast %cst_7 : f32 to vector<16x128xf32>
    %15 = arith.mulf %13, %14 : vector<16x128xf32>
    %c0_8 = arith.constant 0 : index
    %c0_9 = arith.constant 0 : index
    %16 = vector.load %arg4[%c0_8, %c0_9] : memref<16x128xf32, #tpu.memory_space<vmem>>, vector<16x128xf32>
    tpu.vector_store %arg4[%c0_8, %c0_9], %15 {strides = array<i32>} : memref<16x128xf32, #tpu.memory_space<vmem>>, vector<16x128xf32>,
    return
  }
  func.func @transform_0(%arg0: i32) -> (i32, i32) {
    %c0_i32 = arith.constant 0 : i32
    %c0_i32_0 = arith.constant 0 : i32
    return %arg0, %c0_i32 : i32, i32
  }
  func.func @transform_1(%arg0: i32) -> (i32, i32) {
    %c0_i32 = arith.constant 0 : i32
    %c0_i32_0 = arith.constant 0 : i32
    %c0_i32_1 = arith.constant 0 : i32
    return %c0_i32, %c0_i32_0 : i32, i32
  }
  func.func @transform_2(%arg0: i32) -> (i32, i32) {
    %c0_i32 = arith.constant 0 : i32
    %c0_i32_0 = arith.constant 0 : i32
    %c0_i32_1 = arith.constant 0 : i32
    return %c0_i32, %c0_i32_0 : i32, i32
  }
  func.func @transform_3(%arg0: i32) -> (i32, i32) {
    %c0_i32 = arith.constant 0 : i32
    %c0_i32_0 = arith.constant 0 : i32
    return %arg0, %c0_i32 : i32, i32
  }
}

</mosaic_0001>

<bundles_post_ra>
// kernel: tpu_custom_call.1
= control target key start
LH: loop header
LB: loop body
LE: loop exit
PB: predicated region body
PF: predicated region fallthrough
CT: control target
= control target key end

     0   :  { %8 = vsyncpa [#allocation3], 0  ;;  %s360_s0 = inlined_call_operand.hbm [shape: f32[16,32], index: 0, kind: input, shape index: {}]   ;;  %s361_s1 = inlined_call_operand.hbm [shape: f32[32,128], index: 1, kind: input, shape index: {}]   ;;  %s362_s2 = inlined_call_operand.vmem [shape: f32[1,128], index: 2, kind: input, shape index: {}]   ;;  %s363_s3 = inlined_call_operand.hbm [shape: f32[16,128], index: 3, kind: output, shape index: {}]  }
   0x1   :  { %9 = vsyncpa [#allocation6], 0 }
   0x2   :  { %10 = vsyncpa [#allocation4], 0  ;;  %s283_s12 = smov [#allocation2]   ;;  %s211_s16 = scalar_lea.hbm %s360_s0, 256 }
   0x3   :  { %s16_s13 = sshll.u32 %s283_s12, 4  ;;  %p212_p0 = scmp.ne.s32.totalorder %s360_s0, %s211_s16  ;;  %s17_s13 = int_to_ptr.vmem [resolvable:$true] %s16_s13 }
   0x4   :  { %p215_p1 = scmp.lt.u32.totalorder %s211_s16, %s360_s0 }
   0x6   :  { %p217_p2 = pnand %p215_p1, %p212_p0 }
   0x8   :  { %220 = shalt.err (!%p217_p2)
}
   0x9   :  { %s221_s21 = scalar_lea.vmem %s17_s13, 256  ;;  %p226_p4 = scmp.lt.s32.totalorder %s17_s13, %s17_s13 }
   0xa   :  { %p222_p3 = scmp.ne.s32.totalorder %s17_s13, %s221_s21  ;;  %p227_p5 = scmp.lt.s32.totalorder %s221_s21, %s221_s21 }
   0xc   :  { %p228_p6 = por %p227_p5, %p226_p4 }
   0xe   :  { %p229_p7 = pnand %p228_p6, %p222_p3 }
  0x10   :  { %232 = shalt.err (!%p229_p7)
}
  0x11   :  { %s284_s22 = smov 128   ;;  %s285_s23 = smov 8  }
  0x12   :  { %22 = dma.hbm_to_vmem [thread:$0]  %s360_s0, 256, %s17_s13, [#allocation3], %s284_s22, %s284_s22, %s285_s23  }
  0x13   :  { %s286_s26 = smov [#allocation5]   ;;  %s233_s30 = scalar_lea.hbm %s361_s1, 512 }
  0x14   :  { %s28_s27 = sshll.u32 %s286_s26, 4  ;;  %p234_p8 = scmp.ne.s32.totalorder %s361_s1, %s233_s30  ;;  %s29_s27 = int_to_ptr.vmem [resolvable:$true] %s28_s27 }
  0x15   :  { %p237_p9 = scmp.lt.u32.totalorder %s233_s30, %s361_s1 }
  0x17   :  { %p239_p10 = pnand %p237_p9, %p234_p8 }
  0x19   :  { %242 = shalt.err (!%p239_p10)
}
  0x1a   :  { %s243_s8 = scalar_lea.vmem %s29_s27, 512  ;;  %p248_p12 = scmp.lt.s32.totalorder %s29_s27, %s29_s27 }
  0x1b   :  { %p244_p11 = scmp.ne.s32.totalorder %s29_s27, %s243_s8  ;;  %p249_p13 = scmp.lt.s32.totalorder %s243_s8, %s243_s8 }
  0x1d   :  { %p250_p0 = por %p249_p13, %p248_p12 }
  0x1f   :  { %p251_p1 = pnand %p250_p0, %p244_p11 }
  0x21   :  { %254 = shalt.err (!%p251_p1)
}
  0x22   :  { %34 = dma.hbm_to_vmem [thread:$0]  %s361_s1, 512, %s29_s27, [#allocation6], %s284_s22, %s284_s22, %s285_s23  }
  0x23   :  { %277 = dma.done.wait [#allocation3], 256  }
  0x24   :  { %278 = vsyncadd [#allocation3], 4294967040 }
  0x25   :  { %279 = dma.done.wait [#allocation6], 512  }
  0x26   :  { %280 = vsyncadd [#allocation6], 4294966784  ;;  %v43_v0 = vld [vmem:[#allocation2] sm:$0xff]  ;;  %vm47_vm0 = vcmask 261120   ;;  %v44_v1 = vld [vmem:[#allocation2 + $0x8] sm:$0xff]  ;;  %s287_s11 = smov [#allocation7]  }
  0x27   :  { %v45_v2 = vmul.f32 %v43_v0, %v43_v0  ;;  %v46_v3 = vmul.f32 %v44_v1, %v44_v1  ;;  %v60_v6 = vld [vmem:[#allocation5] sm:$0xff]  ;;  %v61_v7 = vld [vmem:[#allocation5 + $0x8] sm:$0xff]  ;;  %v62_v8 = vld [vmem:[#allocation5 + $0x10] sm:$0xff]  ;;  %s161_s12 = sshll.u32 %s287_s11, 4  ;;  %s162_s12 = int_to_ptr.vmem [resolvable:$true] %s161_s12 }
  0x28   :  { %v194_v9 = vpack.c.bf16 %v61_v7, %v60_v6  ;;  %v63_v10 = vld [vmem:[#allocation5 + $0x18] sm:$0xff]  ;;  %v174_v20 = vld [vmem:[%s362_s2] ss:$0 sm:$0xff]  ;;  %s255_s13 = scalar_lea.vmem %s162_s12, 256  ;;  %p260_p3 = scmp.lt.s32.totalorder %s162_s12, %s162_s12 }
  0x29   :  { %v48_v4 = vsel %vm47_vm0, %v45_v2, 0.0  ;;  %v51_v5 = vsel %vm47_vm0, %v46_v3, 0.0  ;;  %v198_v11 = vpack.c.bf16 %v63_v10, %v62_v8  ;;  %p256_p2 = scmp.ne.s32.totalorder %s162_s12, %s255_s13  ;;  %p261_p4 = scmp.lt.s32.totalorder %s255_s13, %s255_s13 }
  0x2a   :  { %49 = vadd.xlane.f32.xlu0 %v48_v4  ;;  %195 = vmatprep.subr.bf16.mxu0 %v194_v9 }
  0x2b   :  { %197 = vmatpush3.bf16.msra.mxu0 %v194_v9  ;;  %p262_p5 = por %p261_p4, %p260_p3 }
  0x2c   :  { %199 = vmatprep.subr.bf16.mxu0 %v198_v11 }
  0x2d   :  { %p263_p6 = pnand %p262_p5, %p256_p2 }
  0x2e   :  { %52 = vadd.xlane.f32.xlu0 %v51_v5 }
  0x2f   :  { %201 = vmatpush3.bf16.msra.mxu0 %v198_v11 }
  0xb7   :  { %v50_v12 = vpop.xlane.xlu0 %49 }
  0xb8   :  { %v54_v13 = vmax.f32 %v50_v12, 1e-24 }
  0xba   :  { %207 = vrsqrt.f32 %v54_v13 }
  0xbb   :  { %v53_v14 = vpop.xlane.xlu0 %52 }
  0xbc   :  { %v55_v15 = vmax.f32 %v53_v14, 1e-24 }
  0xbe   :  { %209 = vrsqrt.f32 %v55_v15 }
  0xc4   :  { %v208_v16 = vpop.eup %207 }
  0xc5   :  { %v58_v17 = vmul.f32 %v208_v16, %v43_v0 }
  0xc7   :  { %191 = vmatprep.mubr.msk.f32.mxu0 %vm47_vm0, %v58_v17 }
  0xc8   :  { %v210_v18 = vpop.eup %209 }
  0xc9   :  { %v59_v19 = vmul.f32 %v210_v18, %v44_v1 }
  0xcb   :  { %192 = vmatmul.mubr.msk.f32.vlgmr.msra.gmra.mrb[0].mxu0 %vm47_vm0, %v59_v19 }
 0x19e   :  { %v193_v21 = vpop.f32.mrb[0].mxu0 }
 0x19f   :  { %v149_v22 = vadd.f32 %v193_v21, %v174_v20  ;;  %v143_v23 = vpop.f32.mrb[1].mxu0 }
 0x1a0   :  { %v144_v24 = vadd.f32 %v174_v20, %v143_v23 }
 0x1a1   :  { %v153_v25 = vmul.f32 2.0, %v149_v22 }
 0x1a2   :  { %v152_v26 = vmul.f32 2.0, %v144_v24 }
 0x1a3   :  { %155 = vst [vmem:[#allocation7 + $0x8] sm:$0xff] %v153_v25 }
 0x1a4   :  { %154 = vst [vmem:[#allocation7] sm:$0xff] %v152_v26 }
 0x1a5   :  { %266 = shalt.err (!%p263_p6)
}
 0x1a6   :  { %s267_s15 = scalar_lea.hbm %s363_s3, 256 }
 0x1a7   :  { %p268_p7 = scmp.ne.s32.totalorder %s363_s3, %s267_s15  ;;  %p271_p8 = scmp.lt.u32.totalorder %s267_s15, %s363_s3 }
 0x1a9   :  { %p273_p9 = pnand %p271_p8, %p268_p7 }
 0x1ab   :  { %276 = shalt.err (!%p273_p9)
}
 0x1ac   :  { %167 = dma.vmem_to_hbm [thread:$0]  %s162_s12, 256, %s363_s3, [#allocation4], %s284_s22, %s284_s22, %s285_s23  }
 0x1ad   :  { %281 = dma.done.wait [#allocation4], 256  }
 0x1ae   :  { %282 = vsyncadd [#allocation4], 4294967040 }
 0x1af   :  { %171 = vsyncpa [#allocation3], 1 }
 0x1b0   :  { %172 = vsyncpa [#allocation6], 1 }
 0x1b1   :  { %173 = vsyncpa [#allocation4], 1 }

</bundles_post_ra>
